<compile_context>
chip_gen: v7x
topology: tpu7x:2x2x1
jax: 0.10.0
libtpu: 0.0.40
codegen_flags: <defaults>
</compile_context>

<pallas_src>
import functools

import jax
import jax.numpy as jnp
from jax import lax
from jax.experimental import pallas as pl
from jax.experimental.pallas import tpu as pltpu

_NEG_BIG = -1e30  # additive mask bias for excluded edges (finite; exp -> 0)


# ----------------------------------------------------------------------------
# Kernel 1: cosine similarity between node embeddings (once per graph update).
# Rows are normalized first (rsqrt on the EUP), then one gram matmul.
# ----------------------------------------------------------------------------
def cosine_sim_kernel(w_ref, out_ref):
    w = w_ref[...]                                               # (N, D)
    wn = w * lax.rsqrt(jnp.sum(w * w, axis=-1, keepdims=True) + 1e-12)
    out_ref[...] = lax.dot_general(wn, wn, (((1,), (1,)), ((), ())),
                                   preferred_element_type=jnp.float32)


# ----------------------------------------------------------------------------
# Kernel 2: fused GDN forward for `bt` batch elements per grid step.
#   GraphLayer (lin + attention + masked softmax + aggregate + bias)
#   -> GNNLayer BatchNorm(eval) + ReLU
#   -> * node embedding -> BatchNorm(eval) + ReLU -> Dropout(identity)
#   -> OutLayer Linear(D, 1) as a lane reduce
# ----------------------------------------------------------------------------
def gdn_fused_kernel(x_ref, wlin_t_ref, cvec_ref, nvec_ref, mask_bias_ref,
                     emb_bn2_ref, out_ref, *, mxu_dtype, exp_dtype):
    n, d = emb_bn2_ref.shape
    bt = x_ref.shape[0] // n

    # GraphLayer.lin : z = x @ W^T (heads=1, bias=False).  x arrives
    # pre-flattened (bt*n, f): the MXU M dimension is filled and the reshape
    # below only splits a sublane-aligned leading axis (n % 8 == 0).
    z2 = jnp.dot(x_ref[...].astype(mxu_dtype), wlin_t_ref[...],
                 preferred_element_type=jnp.float32)             # (bt*n, d)
    z = z2.reshape(bt, n, d)

    # Packed batch-invariant constants.
    att_i     = cvec_ref[0:1, :]                                 # (1, d)
    att_j     = cvec_ref[1:2, :]
    bn1_scale = cvec_ref[2:3, :]
    bias1     = cvec_ref[3:4, :]       # gbias*bn1_scale + bn1_shift
    bn2_shift = cvec_ref[4:5, :]
    wout_row  = cvec_ref[5:6, :]
    bout      = cvec_ref[6:7, 0:1]                               # (1, 1)
    a_emb     = nvec_ref[0:1, :]       # <emb_i, att_em_i>       # (1, n)
    b_emb     = nvec_ref[1:2, :]       # <emb_j, att_em_j>

    # Per-node attention terms (embedding parts precomputed on the host).
    a = jnp.sum(z * att_i, axis=-1) + a_emb                      # (bt, n) target
    b = jnp.sum(z * att_j, axis=-1) + b_emb                      # (bt, n) source

    # e[b,i,j] = leaky_relu(a[b,i] + b[b,j], 0.2) + mask_bias[i,j]
    # Pure VPU broadcast add; the mask is an additive bias (no compare/select).
    e = a[:, :, None] + b[:, None, :]                            # (bt, n, n)
    e = jnp.where(e > 0, e, 0.2 * e)
    e = e + mask_bias_ref[...]

    # Row softmax over source nodes j.  Self loops (also on padded rows) keep
    # every row max finite, so masked logits underflow to exactly 0 after exp.
    # exp runs on the EUP (bf16 on v6e/v7x, f32 on v5e); the divide is an
    # approximate EUP reciprocal.
    # NOTE: if bt*(n, n) ever outgrows VMEM even at the smallest legal bt,
    # tile this softmax+aggregation over source-node chunks (online softmax).
    e = e - jnp.max(e, axis=-1, keepdims=True)
    p = jnp.exp(e.astype(exp_dtype)).astype(jnp.float32)
    p = p * pl.reciprocal(jnp.sum(p, axis=-1, keepdims=True), approx=True)

    # Aggregation (aggr='add') with GNNLayer BatchNorm(eval) scale folded in:
    #   (p @ z + gbias) * s1 + b1  ==  p @ (z * s1) + (gbias * s1 + b1)
    z_s = (z * bn1_scale).astype(mxu_dtype)
    h = jnp.einsum('bij,bjd->bid', p.astype(mxu_dtype), z_s,
                   preferred_element_type=jnp.float32)
    h = jnp.maximum(h + bias1, 0.0)                              # GNNLayer ReLU

    # * embedding (BN2 scale folded into emb), BN2 shift, ReLU, Dropout(id).
    g = jnp.maximum(h * emb_bn2_ref[...] + bn2_shift, 0.0)

    # OutLayer (layer_num=1): Linear(D, 1) as a lane reduce.  The (bt, n)
    # block spans the output's full last dim -> contiguous HBM writeback; with
    # n padded to 128 the stores are unmasked full-lane vst.
    out_ref[...] = jnp.sum(g * wout_row, axis=-1) + bout


# ----------------------------------------------------------------------------
# Host-side glue: hardware query, batch-tile picker, graph construction.
# ----------------------------------------------------------------------------
def _tpu_arch():
    """-> (physical VMEM bytes per core, is_v7x (2 TensorCores), bf16 EUP/VPU)."""
    try:
        kind = jax.devices()[0].device_kind.lower()
    except Exception:
        kind = ""
    is_v7 = ("v7" in kind) or ("7x" in kind)
    pre_v6 = any(t in kind for t in ("v2", "v3", "v4", "v5"))
    vmem_bytes = (64 if is_v7 else 128) * 1024 * 1024
    return vmem_bytes, is_v7, not pre_v6


def _vmem_estimate(bt, n, f, d):
    """Rough per-step VMEM footprint (bytes): pipeline buffers + live values."""
    w = 4
    io = 2 * bt * n * (f + 1) * w                                # 2x-buffered x / out tiles
    consts = 2 * (n * n + n * d + f * d + 8 * d + 2 * n) * w     # 2x-buffered constants
    live = bt * (2 * n * n + 4 * n * d) * w                      # e, p + z / z_s / h / g
    return io + consts + live


def _pick_block_batch(batch, n_pad, f, d, vmem_budget, two_cores):
    """Batch elements per grid step.

    Legality: the (bt, n_pad) out block needs bt % 8 == 0 or bt == batch.
    Preference: (1) fit the VMEM budget -- the (bt, N, N) softmax
    intermediates are what gate bt, especially on v7x's 64 MiB; (2) on v7x an
    even number of grid steps so dimension_semantics=("parallel",) shards the
    batch axis across both TensorCores; (3) the largest tile (fills the MXU M
    dim and amortizes the ~0.35us per-grid-step pipeline overhead).
    """
    legal = [bt for bt in range(1, batch + 1)
             if batch % bt == 0 and (bt % 8 == 0 or bt == batch)]
    fits = [bt for bt in legal if _vmem_estimate(bt, n_pad, f, d) <= vmem_budget]
    if not fits:
        # Even the smallest legal tile overflows the budget (very large N):
        # fall back and let the compiler spill; the structural fix is the
        # online-softmax tiling noted in gdn_fused_kernel.
        return min(legal)
    if two_cores:
        even = [bt for bt in fits if (batch // bt) >= 2 and (batch // bt) % 2 == 0]
        if even:
            return max(even)
    return max(fits)


def learned_graph_mask(emb_weight, topk):
    """cosine sim (Pallas) -> top-k (JAX) -> dense adjacency mask (f32 {0,1})."""
    n, _ = emb_weight.shape
    cos = pl.pallas_call(
        cosine_sim_kernel,
        out_shape=jax.ShapeDtypeStruct((n, n), jnp.float32),
    )(emb_weight)
    # TODO(synk): top-k neighbour selection has no clean Pallas/TPU primitive;
    # done with lax.top_k in plain JAX (graph-structure glue, not the hot path).
    _, topk_idx = lax.top_k(cos, topk)                           # (N, topk)
    onehot = jax.nn.one_hot(topk_idx, n, dtype=jnp.float32)      # (N, topk, N)
    mask = jnp.clip(jnp.sum(onehot, axis=1), 0.0, 1.0)
    mask = jnp.maximum(mask, jnp.eye(n, dtype=jnp.float32))      # add_self_loops
    return mask, topk_idx


def gdn_forward(data, params, mask, block_batch=None, use_bf16=True):
    batch, n, f = data.shape
    d = params["emb"].shape[1]
    n_pad = ((n + 7) // 8) * 8     # production note: pad to 128 where affordable

    vmem_phys, is_v7, has_bf16_eup = _tpu_arch()
    vmem_budget = (vmem_phys * 3) // 4                 # headroom for compiler scratch
    bt = (block_batch if block_batch is not None
          else _pick_block_batch(batch, n_pad, f, d, vmem_budget, is_v7))
    assert batch % bt == 0, "block_batch must divide batch"

    mxu_dtype = jnp.bfloat16 if use_bf16 else jnp.float32
    exp_dtype = jnp.bfloat16 if (use_bf16 and has_bf16_eup) else jnp.float32

    # ---- host-side constant folding (batch-invariant, trivially cheap) ----
    emb, att = params["emb"], params["att"]
    bias1 = (params["gbias"] * params["bn1_scale"] + params["bn1_shift"]).reshape(d)
    cvec = jnp.zeros((8, d), jnp.float32)
    cvec = cvec.at[0].set(att[0])                                # att_i (lin part)
    cvec = cvec.at[1].set(att[1])                                # att_j (lin part)
    cvec = cvec.at[2].set(params["bn1_scale"].reshape(d))
    cvec = cvec.at[3].set(bias1)
    cvec = cvec.at[4].set(params["bn2_shift"].reshape(d))
    cvec = cvec.at[5].set(params["wout"].reshape(d))
    cvec = cvec.at[6, 0].set(params["bout"].reshape(()))

    nvec = jnp.zeros((2, n_pad), jnp.float32)
    nvec = nvec.at[0, :n].set(jnp.sum(emb * att[2], axis=-1))    # <emb_i, att_em_i>
    nvec = nvec.at[1, :n].set(jnp.sum(emb * att[3], axis=-1))    # <emb_j, att_em_j>

    emb_bn2 = jnp.zeros((n_pad, d), jnp.float32).at[:n].set(emb * params["bn2_scale"])

    # Additive attention-mask bias (f32: no per-logit compare/select and no
    # bf16 compares on v5e).  Self loops also on padded rows keep every
    # softmax row max finite.
    mask_p = jnp.zeros((n_pad, n_pad), jnp.float32).at[:n, :n].set(mask)
    mask_p = jnp.maximum(mask_p, jnp.eye(n_pad, dtype=jnp.float32))
    mask_bias = jnp.where(mask_p > 0, 0.0, _NEG_BIG).astype(jnp.float32)

    # Pad the node axis to a sublane multiple and pre-flatten x so the
    # in-kernel (bt*n, d) -> (bt, n, d) reshape never touches the lane dim.
    x_pad = jnp.zeros((batch, n_pad, f), jnp.float32).at[:, :n].set(data)
    x_flat = x_pad.reshape(batch * n_pad, f)

    wlin_t = params["wlin_t"].astype(mxu_dtype)

    const = lambda shape: pl.BlockSpec(shape, lambda b: (0, 0))
    # NOTE: batch-invariant inputs are double-buffered by the default pipeline
    # (< ~0.3 MiB even at N=128; accounted for in _vmem_estimate).
    kernel = functools.partial(gdn_fused_kernel,
                               mxu_dtype=mxu_dtype, exp_dtype=exp_dtype)

    out = pl.pallas_call(
        kernel,
        out_shape=jax.ShapeDtypeStruct((batch, n_pad), jnp.float32),
        grid=(batch // bt,),
        in_specs=[
            pl.BlockSpec((bt * n_pad, f), lambda b: (b, 0)),     # x, pre-flattened
            const((f, d)),                                       # GraphLayer.lin W^T
            const((8, d)),                                       # packed per-feature consts
            const((2, n_pad)),                                   # packed per-node consts
            const((n_pad, n_pad)),                               # additive mask bias
            const((n_pad, d)),                                   # emb * bn2_scale
        ],
        out_specs=pl.BlockSpec((bt, n_pad), lambda b: (b, 0)),
        compiler_params=pltpu.CompilerParams(
            dimension_semantics=("parallel",),
            vmem_limit_bytes=int(vmem_budget)),
    )(x_flat, wlin_t, cvec, nvec, mask_bias, emb_bn2)

    return out[:, :n]                                            # (batch, node_num)


def init_gdn_params(key, node_num, dim, input_dim):
    """Deterministic synthetic parameters matching the module's shapes."""
    ks = jax.random.split(key, 6)
    emb = jax.random.uniform(ks[0], (node_num, dim), jnp.float32, -0.5, 0.5)    # nn.Embedding.weight
    wlin = jax.random.uniform(ks[1], (dim, input_dim), jnp.float32, -0.3, 0.3)  # GraphLayer.lin.weight
    att = jax.random.uniform(ks[2], (4, dim), jnp.float32, -0.3, 0.3)           # att_i, att_j, att_em_i, att_em_j
    gbias = jax.random.uniform(ks[3], (1, dim), jnp.float32, -0.1, 0.1)         # GraphLayer.bias
    wout = jax.random.uniform(ks[4], (dim, 1), jnp.float32, -0.3, 0.3)          # OutLayer Linear weight^T
    bout = jax.random.uniform(ks[5], (1, 1), jnp.float32, -0.1, 0.1)            # OutLayer Linear bias
    # BatchNorm1d at init, eval mode: gamma=1, beta=0, running mean/var = 0/1.
    eps = 1e-5
    gamma = jnp.ones((dim,), jnp.float32)
    beta = jnp.zeros((dim,), jnp.float32)
    rmean = jnp.zeros((dim,), jnp.float32)
    rvar = jnp.ones((dim,), jnp.float32)
    scale = (gamma / jnp.sqrt(rvar + eps)).reshape(1, dim)
    shift = (beta - rmean * gamma / jnp.sqrt(rvar + eps)).reshape(1, dim)
    return dict(emb=emb, wlin_t=wlin.T, att=att, gbias=gbias,
                bn1_scale=scale, bn1_shift=shift,
                bn2_scale=scale, bn2_shift=shift,
                wout=wout, bout=bout)


def gdn_reference(data, params, mask, mm_dtype=jnp.float32, exp_dtype=jnp.float32):
    """Pure-JAX eval-mode reference.  With the default f32 dtypes this is the
    exact module semantics; bf16 dtypes emulate the kernel's mixed-precision
    MXU / EUP paths for a precision-matched comparison."""
    hp = jax.lax.Precision.HIGHEST
    emb, att = params["emb"], params["att"]
    z = jnp.einsum('bnf,fd->bnd', data.astype(mm_dtype),
                   params["wlin_t"].astype(mm_dtype),
                   precision=hp, preferred_element_type=jnp.float32)
    a = jnp.sum(z * att[0] + emb * att[2], -1, keepdims=True)
    b = jnp.sum(z * att[1] + emb * att[3], -1, keepdims=True)
    e = a + jnp.swapaxes(b, -1, -2)
    e = jnp.where(e > 0, e, 0.2 * e)
    e = jnp.where(mask > 0, e, _NEG_BIG)
    e = e - e.max(-1, keepdims=True)
    p = jnp.exp(e.astype(exp_dtype)).astype(jnp.float32) * mask
    p = p / p.sum(-1, keepdims=True)
    h = jnp.einsum('bij,bjd->bid', p.astype(mm_dtype), z.astype(mm_dtype),
                   precision=hp, preferred_element_type=jnp.float32) + params["gbias"]
    h = jnp.maximum(h * params["bn1_scale"] + params["bn1_shift"], 0.0)
    g = h * emb
    g = jnp.maximum(g * params["bn2_scale"] + params["bn2_shift"], 0.0)
    o = jnp.einsum('bnd,do->bno', g, params["wout"],
                   precision=hp, preferred_element_type=jnp.float32) + params["bout"]
    return o.reshape(data.shape[0], data.shape[1])


if __name__ == "__main__":
    # Shapes consistent with GDN(node_num, dim=64, input_dim=10, topk=20);
    # node_num=128 matches the recommended lane-friendly padding (e.g. a
    # 127-sensor deployment padded to 128).
    batch, node_num, dim, input_dim, topk = 2, 128, 64, 10, 20

    key = jax.random.PRNGKey(0)
    kp, kd = jax.random.split(key)
    params = init_gdn_params(kp, node_num, dim, input_dim)
    data = jax.random.normal(kd, (batch, node_num, input_dim), jnp.float32)

    mask, learned_graph = learned_graph_mask(params["emb"], topk)

    # 1) all-f32 kernel variant: tight check against the eval-mode reference.
    out_f32 = jax.block_until_ready(gdn_forward(data, params, mask, use_bf16=False))
    ref = gdn_reference(data, params, mask)
    assert out_f32.shape == (batch, node_num)
    assert jnp.allclose(out_f32, ref, atol=5e-3, rtol=5e-3)

    # 2) default mixed-precision kernel (bf16 MXU operands on all generations,
    #    bf16 EUP exp on v6e/v7x): check against a precision-matched reference.
    out = jax.block_until_ready(gdn_forward(data, params, mask))
    _, _, _has_bf16_eup = _tpu_arch()
    ref_mp = gdn_reference(
        data, params, mask, mm_dtype=jnp.bfloat16,
        exp_dtype=jnp.bfloat16 if _has_bf16_eup else jnp.float32)
    assert out.shape == (batch, node_num)
    assert jnp.allclose(out, ref_mp, atol=1.5e-2, rtol=1.5e-2)

    print("KERNEL_OK")
</pallas_src>

<mosaic_0001>
module attributes {stable_mosaic.version = 11 : i64} {
  func.func @cosine_sim_kernel(%arg0: memref<128x64xf32, #tpu.memory_space<vmem>>, %arg1: memref<128x128xf32, #tpu.memory_space<vmem>>) attributes {dimension_semantics = [], scalar_prefetch = 0 : i64, scratch_operands = 0 : i64, tpu.core_type = #tpu.core_type<tc>} {
    %c0 = arith.constant 0 : index
    %c0_0 = arith.constant 0 : index
    %0 = vector.load %arg0[%c0, %c0_0] : memref<128x64xf32, #tpu.memory_space<vmem>>, vector<128x64xf32>
    %1 = arith.mulf %0, %0 : vector<128x64xf32>
    %cst = arith.constant dense<0.000000e+00> : vector<128xf32>
    %2 = vector.multi_reduction <add>, %1, %cst [1] : vector<128x64xf32> to vector<128xf32>
    %3 = vector.shape_cast %2 : vector<128xf32> to vector<128x1xf32>
    %cst_1 = arith.constant 9.99999996E-13 : f32
    %4 = vector.broadcast %cst_1 : f32 to vector<128x1xf32>
    %5 = arith.addf %3, %4 : vector<128x1xf32>
    %6 = math.rsqrt %5 : vector<128x1xf32>
    %7 = vector.broadcast %6 : vector<128x1xf32> to vector<128x64xf32>
    %8 = arith.mulf %0, %7 : vector<128x64xf32>
    %cst_2 = arith.constant dense<0.000000e+00> : vector<128x128xf32>
    %9 = tpu.matmul %8, %8, %cst_2 {dimension_numbers = #tpu.dot_dimension_numbers<[1], [1], [0], [0], [0, 0, 1, 0], [], []>} : vector<128x64xf32>, vector<128x64xf32>, vector<128x128xf32> -> vector<128x128xf32>
    %c0_3 = arith.constant 0 : index
    %c0_4 = arith.constant 0 : index
    %10 = vector.load %arg1[%c0_3, %c0_4] : memref<128x128xf32, #tpu.memory_space<vmem>>, vector<128x128xf32>
    tpu.vector_store %arg1[%c0_3, %c0_4], %9 {strides = array<i32>} : memref<128x128xf32, #tpu.memory_space<vmem>>, vector<128x128xf32>,
    return
  }
}

</mosaic_0001>

<bundles_post_ra>
// kernel: tpu_custom_call.1
= control target key start
LH: loop header
LB: loop body
LE: loop exit
PB: predicated region body
PF: predicated region fallthrough
CT: control target
= control target key end

     0   :  { %vm41_vm0 = vcmask 523264   ;;  %s889_s0 = inlined_call_operand.vmem [shape: f32[128,64], index: 0, kind: input, shape index: {}]   ;;  %s890_s1 = inlined_call_operand.hbm [shape: f32[128,128], index: 1, kind: output, shape index: {}]  }
   0x1   :  { %v622_v0 = vld [vmem:[%s889_s0] sm:$0xff]  ;;  %v627_v1 = vld [vmem:[%s889_s0 + $0x10] sm:$0xff]  ;;  %v632_v2 = vld [vmem:[%s889_s0 + $0x8] sm:$0xff] }
   0x2   :  { %v25_v3 = vmul.f32 %v622_v0, %v622_v0  ;;  %v27_v4 = vmul.f32 %v627_v1, %v627_v1  ;;  %v26_v5 = vmul.f32 %v632_v2, %v632_v2  ;;  %v643_v6 = vld [vmem:[%s889_s0 + $0x18] sm:$0xff]  ;;  %v650_v8 = vld [vmem:[%s889_s0 + $0x28] sm:$0xff]  ;;  %v655_v9 = vld [vmem:[%s889_s0 + $0x20] sm:$0xff] }
   0x3   :  { %v28_v7 = vmul.f32 %v643_v6, %v643_v6  ;;  %v30_v14 = vmul.f32 %v650_v8, %v650_v8  ;;  %v29_v15 = vmul.f32 %v655_v9, %v655_v9 }
   0x4   :  { %v42_v10 = vsel %vm41_vm0, %v25_v3, 0.0  ;;  %v48_v11 = vsel %vm41_vm0, %v27_v4, 0.0  ;;  %v45_v12 = vsel %vm41_vm0, %v26_v5, 0.0 }
   0x5   :  { %43 = vadd.xlane.f32.xlu0 %v42_v10  ;;  %49 = vadd.xlane.f32.xlu1 %v48_v11  ;;  %v51_v13 = vsel %vm41_vm0, %v28_v7, 0.0 }
   0x6   :  { %6 = vsyncpa [#allocation3], 0  ;;  %v668_v16 = vld [vmem:[%s889_s0 + $0x38] sm:$0xff]  ;;  %v673_v17 = vld [vmem:[%s889_s0 + $0x30] sm:$0xff]  ;;  %v57_v18 = vsel %vm41_vm0, %v30_v14, 0.0  ;;  %v54_v19 = vsel %vm41_vm0, %v29_v15, 0.0 }
   0x7   :  { %v32_v20 = vmul.f32 %v668_v16, %v668_v16  ;;  %v31_v21 = vmul.f32 %v673_v17, %v673_v17  ;;  %v684_v22 = vld [vmem:[%s889_s0 + $0x48] sm:$0xff]  ;;  %v689_v23 = vld [vmem:[%s889_s0 + $0x40] sm:$0xff]  ;;  %v700_v28 = vld [vmem:[%s889_s0 + $0x58] sm:$0xff] }
   0x8   :  { %v34_v26 = vmul.f32 %v684_v22, %v684_v22  ;;  %v33_v27 = vmul.f32 %v689_v23, %v689_v23  ;;  %v705_v29 = vld [vmem:[%s889_s0 + $0x50] sm:$0xff]  ;;  %v36_v32 = vmul.f32 %v700_v28, %v700_v28  ;;  %v716_v34 = vld [vmem:[%s889_s0 + $0x68] sm:$0xff]  ;;  %v721_v35 = vld [vmem:[%s889_s0 + $0x60] sm:$0xff] }
   0x9   :  { %46 = vadd.xlane.f32.xlu0 %v45_v12  ;;  %52 = vadd.xlane.f32.xlu1 %v51_v13  ;;  %v63_v24 = vsel %vm41_vm0, %v32_v20, 0.0  ;;  %v60_v25 = vsel %vm41_vm0, %v31_v21, 0.0  ;;  %v35_v33 = vmul.f32 %v705_v29, %v705_v29  ;;  %v38_v38 = vmul.f32 %v716_v34, %v716_v34  ;;  %v732_v40 = vld [vmem:[%s889_s0 + $0x78] sm:$0xff]  ;;  %v737_v41 = vld [vmem:[%s889_s0 + $0x70] sm:$0xff]  ;;  %vm757_vm1 = vmpackc.low %vm41_vm0, %vm41_vm0  ;;  %s606_s0 = smov [#allocation2]  }
   0xa   :  { %v69_v30 = vsel %vm41_vm0, %v34_v26, 0.0  ;;  %v66_v31 = vsel %vm41_vm0, %v33_v27, 0.0  ;;  %v75_v36 = vsel %vm41_vm0, %v36_v32, 0.0  ;;  %v37_v39 = vmul.f32 %v721_v35, %v721_v35  ;;  %s352_s9 = sshll.u32 %s606_s0, 4  ;;  %s353_s9 = int_to_ptr.vmem [resolvable:$true] %s352_s9 }
   0xb   :  { %v72_v37 = vsel %vm41_vm0, %v35_v33, 0.0  ;;  %v81_v42 = vsel %vm41_vm0, %v38_v38, 0.0  ;;  %v40_v44 = vmul.f32 %v732_v40, %v732_v40  ;;  %v39_v45 = vmul.f32 %v737_v41, %v737_v41  ;;  %s582_s10 = scalar_lea.vmem %s353_s9, 2048  ;;  %p587_p1 = scmp.lt.s32.totalorder %s353_s9, %s353_s9 }
   0xc   :  { %v78_v43 = vsel %vm41_vm0, %v37_v39, 0.0  ;;  %p583_p0 = scmp.ne.s32.totalorder %s353_s9, %s582_s10  ;;  %p588_p2 = scmp.lt.s32.totalorder %s582_s10, %s582_s10 }
   0xd   :  { %58 = vadd.xlane.f32.xlu1 %v57_v18  ;;  %55 = vadd.xlane.f32.xlu0 %v54_v19  ;;  %v87_v46 = vsel %vm41_vm0, %v40_v44, 0.0  ;;  %v84_v47 = vsel %vm41_vm0, %v39_v45, 0.0 }
   0xe   :  { %p589_p3 = por %p588_p2, %p587_p1 }
  0x10   :  { %p590_p4 = pnand %p589_p3, %p583_p0 }
  0x11   :  { %64 = vadd.xlane.f32.xlu1 %v63_v24  ;;  %61 = vadd.xlane.f32.xlu0 %v60_v25 }
  0x15   :  { %70 = vadd.xlane.f32.xlu1 %v69_v30  ;;  %67 = vadd.xlane.f32.xlu0 %v66_v31 }
  0x19   :  { %76 = vadd.xlane.f32.xlu1 %v75_v36  ;;  %73 = vadd.xlane.f32.xlu0 %v72_v37 }
  0x1d   :  { %82 = vadd.xlane.f32.xlu1 %v81_v42  ;;  %79 = vadd.xlane.f32.xlu0 %v78_v43 }
  0x21   :  { %88 = vadd.xlane.f32.xlu1 %v87_v46  ;;  %85 = vadd.xlane.f32.xlu0 %v84_v47 }
  0x92   :  { %v44_v48 = vpop.xlane.xlu0 %43  ;;  %v50_v49 = vpop.xlane.xlu1 %49 }
  0x93   :  { %v90_v50 = vadd.f32 1e-12, %v44_v48  ;;  %v92_v51 = vadd.f32 1e-12, %v50_v49 }
  0x95   :  { %550 = vrsqrt.f32 %v90_v50 }
  0x96   :  { %552 = vrsqrt.f32 %v92_v51  ;;  %v47_v52 = vpop.xlane.xlu0 %46  ;;  %v53_v53 = vpop.xlane.xlu1 %52 }
  0x97   :  { %v91_v54 = vadd.f32 1e-12, %v47_v52  ;;  %v93_v55 = vadd.f32 1e-12, %v53_v53 }
  0x99   :  { %554 = vrsqrt.f32 %v91_v54 }
  0x9a   :  { %556 = vrsqrt.f32 %v93_v55  ;;  %v59_v56 = vpop.xlane.xlu1 %58  ;;  %v56_v57 = vpop.xlane.xlu0 %55 }
  0x9b   :  { %v95_v58 = vadd.f32 1e-12, %v59_v56  ;;  %v94_v59 = vadd.f32 1e-12, %v56_v57 }
  0x9d   :  { %558 = vrsqrt.f32 %v95_v58 }
  0x9e   :  { %560 = vrsqrt.f32 %v94_v59  ;;  %v65_v60 = vpop.xlane.xlu1 %64  ;;  %v62_v61 = vpop.xlane.xlu0 %61 }
  0x9f   :  { %v551_v62 = vpop.eup %550  ;;  %v97_v4 = vadd.f32 1e-12, %v65_v60  ;;  %v96_v5 = vadd.f32 1e-12, %v62_v61 }
  0xa0   :  { %v553_v63 = vpop.eup %552  ;;  %v122_v3 = vmul.f32 %v551_v62, %v622_v0 }
  0xa1   :  { %v750_v11 = vmul.f32 %v553_v63, %v627_v1  ;;  %562 = vrsqrt.f32 %v97_v4 }
  0xa2   :  { %459 = vmatprep.mubr.msk.f32.mxu0 %vm41_vm0, %v122_v3  ;;  %v68_v7 = vpop.xlane.xlu0 %67  ;;  %564 = vrsqrt.f32 %v96_v5  ;;  %v71_v1 = vpop.xlane.xlu1 %70 }
  0xa3   :  { %v555_v10 = vpop.eup %554  ;;  %v98_v12 = vadd.f32 1e-12, %v68_v7 }
  0xa4   :  { %v557_v13 = vpop.eup %556  ;;  %v753_v14 = vmul.f32 %v555_v10, %v632_v2 }
  0xa5   :  { %v762_v0 = vmul.f32 %v557_v13, %v643_v6  ;;  %566 = vrsqrt.f32 %v98_v12  ;;  %v99_v6 = vadd.f32 1e-12, %v71_v1 }
  0xa6   :  { %v483_v18 = vpack.c.bf16 %v753_v14, %v122_v3  ;;  %v77_v25 = vpop.xlane.xlu1 %76  ;;  %v74_v30 = vpop.xlane.xlu0 %73 }
  0xa7   :  { %v559_v19 = vpop.eup %558  ;;  %v489_v2 = vpack.c.bf16 %v762_v0, %v750_v11  ;;  %568 = vrsqrt.f32 %v99_v6  ;;  %v101_v33 = vadd.f32 1e-12, %v77_v25 }
  0xa8   :  { %v561_v20 = vpop.eup %560  ;;  %485 = vmatprep.subr.msk.bf16.mxu0 %vm757_vm1, %v483_v18  ;;  %531 = vmatprep.subr.msk.bf16.mxu1 %vm757_vm1, %v483_v18  ;;  %v783_v24 = vmul.f32 %v559_v19, %v650_v8 }
  0xa9   :  { %488 = vmatpush3.bf16.xpose.msk.msra.mxu0 %vm757_vm1, %v483_v18  ;;  %539 = vmatpush3.bf16.xpose.msk.msra.mxu1 %vm757_vm1, %v483_v18  ;;  %v780_v21 = vmul.f32 %v561_v20, %v655_v9  ;;  %v100_v9 = vadd.f32 1e-12, %v74_v30  ;;  %570 = vrsqrt.f32 %v101_v33 }
  0xaa   :  { %491 = vmatprep.subr.msk.bf16.mxu0 %vm757_vm1, %v489_v2  ;;  %532 = vmatprep.subr.msk.bf16.mxu1 %vm757_vm1, %v489_v2  ;;  %v83_v38 = vpop.xlane.xlu1 %82  ;;  %v80_v39 = vpop.xlane.xlu0 %79 }
  0xab   :  { %v563_v26 = vpop.eup %562  ;;  %v495_v27 = vpack.c.bf16 %v783_v24, %v780_v21  ;;  %572 = vrsqrt.f32 %v100_v9  ;;  %v103_v43 = vadd.f32 1e-12, %v83_v38 }
  0xac   :  { %v565_v31 = vpop.eup %564  ;;  %v800_v37 = vmul.f32 %v563_v26, %v668_v16 }
  0xad   :  { %v797_v36 = vmul.f32 %v565_v31, %v673_v17  ;;  %v102_v17 = vadd.f32 1e-12, %v80_v39  ;;  %574 = vrsqrt.f32 %v103_v43 }
  0xae   :  { %v89_v44 = vpop.xlane.xlu1 %88  ;;  %v86_v47 = vpop.xlane.xlu0 %85 }
  0xaf   :  { %v567_v32 = vpop.eup %566  ;;  %576 = vrsqrt.f32 %v102_v17  ;;  %v105_v49 = vadd.f32 1e-12, %v89_v44  ;;  %v104_v50 = vadd.f32 1e-12, %v86_v47 }
  0xb0   :  { %v130_v8 = vmul.f32 %v567_v32, %v689_v23  ;;  %v501_v23 = vpack.c.bf16 %v800_v37, %v797_v36 }
  0xb1   :  { %494 = vmatpush3.bf16.xpose.msk.msra.mxu0 %vm757_vm1, %v489_v2  ;;  %540 = vmatpush3.bf16.xpose.msk.msra.mxu1 %vm757_vm1, %v489_v2  ;;  %v569_v42 = vpop.eup %568  ;;  %578 = vrsqrt.f32 %v105_v49 }
  0xb2   :  { %497 = vmatprep.subr.msk.bf16.mxu0 %vm757_vm1, %v495_v27  ;;  %533 = vmatprep.subr.msk.bf16.mxu1 %vm757_vm1, %v495_v27  ;;  %v131_v16 = vmul.f32 %v569_v42, %v684_v22  ;;  %580 = vrsqrt.f32 %v104_v50 }
  0xb3   :  { %471 = vmatprep.mubr.msk.f32.mxu1 %vm41_vm0, %v130_v8  ;;  %v571_v45 = vpop.eup %570 }
  0xb4   :  { %v507_v46 = vpack.c.bf16 %v131_v16, %v130_v8  ;;  %v133_v51 = vmul.f32 %v571_v45, %v700_v28 }
  0xb5   :  { %v573_v48 = vpop.eup %572 }
  0xb6   :  { %v132_v22 = vmul.f32 %v573_v48, %v705_v29 }
  0xb7   :  { %v575_v52 = vpop.eup %574 }
  0xb8   :  { %v513_v53 = vpack.c.bf16 %v133_v51, %v132_v22  ;;  %v135_v28 = vmul.f32 %v575_v52, %v716_v34 }
  0xb9   :  { %500 = vmatpush3.bf16.xpose.msk.msra.mxu0 %vm757_vm1, %v495_v27  ;;  %541 = vmatpush3.bf16.xpose.msk.msra.mxu1 %vm757_vm1, %v495_v27  ;;  %v577_v54 = vpop.eup %576 }
  0xba   :  { %503 = vmatprep.subr.msk.bf16.mxu0 %vm757_vm1, %v501_v23  ;;  %534 = vmatprep.subr.msk.bf16.mxu1 %vm757_vm1, %v501_v23  ;;  %v134_v29 = vmul.f32 %v577_v54, %v721_v35 }
  0xbb   :  { %v579_v55 = vpop.eup %578 }
  0xbc   :  { %v519_v56 = vpack.c.bf16 %v135_v28, %v134_v29  ;;  %v581_v57 = vpop.eup %580  ;;  %v137_v35 = vmul.f32 %v579_v55, %v732_v40 }
  0xbd   :  { %v136_v58 = vmul.f32 %v581_v57, %v737_v41 }
  0xbf   :  { %v525_v34 = vpack.c.bf16 %v137_v35, %v136_v58 }
  0xc1   :  { %506 = vmatpush3.bf16.xpose.msk.msra.mxu0 %vm757_vm1, %v501_v23  ;;  %542 = vmatpush3.bf16.xpose.msk.msra.mxu1 %vm757_vm1, %v501_v23 }
  0xc2   :  { %509 = vmatprep.subr.msk.bf16.mxu0 %vm757_vm1, %v507_v46  ;;  %535 = vmatprep.subr.msk.bf16.mxu1 %vm757_vm1, %v507_v46 }
  0xc9   :  { %512 = vmatpush3.bf16.xpose.msk.msra.mxu0 %vm757_vm1, %v507_v46  ;;  %543 = vmatpush3.bf16.xpose.msk.msra.mxu1 %vm757_vm1, %v507_v46 }
  0xca   :  { %515 = vmatprep.subr.msk.bf16.mxu0 %vm757_vm1, %v513_v53  ;;  %536 = vmatprep.subr.msk.bf16.mxu1 %vm757_vm1, %v513_v53 }
  0xd1   :  { %518 = vmatpush3.bf16.xpose.msk.msra.mxu0 %vm757_vm1, %v513_v53  ;;  %544 = vmatpush3.bf16.xpose.msk.msra.mxu1 %vm757_vm1, %v513_v53 }
  0xd2   :  { %521 = vmatprep.subr.msk.bf16.mxu0 %vm757_vm1, %v519_v56  ;;  %537 = vmatprep.subr.msk.bf16.mxu1 %vm757_vm1, %v519_v56 }
  0xd9   :  { %524 = vmatpush3.bf16.xpose.msk.msra.mxu0 %vm757_vm1, %v519_v56  ;;  %545 = vmatpush3.bf16.xpose.msk.msra.mxu1 %vm757_vm1, %v519_v56 }
  0xda   :  { %527 = vmatprep.subr.msk.bf16.mxu0 %vm757_vm1, %v525_v34  ;;  %538 = vmatprep.subr.msk.bf16.mxu1 %vm757_vm1, %v525_v34 }
  0xe1   :  { %530 = vmatpush3.bf16.xpose.msk.msra.mxu0 %vm757_vm1, %v525_v34  ;;  %546 = vmatpush3.bf16.xpose.msk.msra.mxu1 %vm757_vm1, %v525_v34 }
  0xe8   :  { %460 = vmatmul.mubr.msk.f32.vlgmr.msra.gmra.mrb[0].mxu0 %vm41_vm0, %v753_v14  ;;  %472 = vmatmul.mubr.msk.f32.vlgmr.msra.gmra.mrb[0].mxu1 %vm41_vm0, %v131_v16 }
  0xe9   :  { %462 = vmatprep.mubr.msk.f32.mxu0 %vm41_vm0, %v750_v11  ;;  %474 = vmatprep.mubr.msk.f32.mxu1 %vm41_vm0, %v132_v22 }
  0xec   :  { %463 = vmatmul.mubr.msk.f32.gmra.mrb[2].mxu0 %vm41_vm0, %v762_v0  ;;  %475 = vmatmul.mubr.msk.f32.gmra.mrb[2].mxu1 %vm41_vm0, %v133_v51 }
  0xed   :  { %465 = vmatprep.mubr.msk.f32.mxu0 %vm41_vm0, %v780_v21  ;;  %477 = vmatprep.mubr.msk.f32.mxu1 %vm41_vm0, %v134_v29 }
  0xf0   :  { %466 = vmatmul.mubr.msk.f32.gmra.mrb[4].mxu0 %vm41_vm0, %v783_v24  ;;  %478 = vmatmul.mubr.msk.f32.gmra.mrb[4].mxu1 %vm41_vm0, %v135_v28 }
  0xf1   :  { %468 = vmatprep.mubr.msk.f32.mxu0 %vm41_vm0, %v797_v36  ;;  %480 = vmatprep.mubr.msk.f32.mxu1 %vm41_vm0, %v136_v58 }
  0xf4   :  { %469 = vmatmul.mubr.msk.f32.gmra.mrb[6].mxu0 %vm41_vm0, %v800_v37  ;;  %481 = vmatmul.mubr.msk.f32.gmra.mrb[6].mxu1 %vm41_vm0, %v137_v35 }
 0x1bb   :  { %v461_v40 = vpop.f32.mrb[0].mxu0  ;;  %v473_v41 = vpop.f32.mrb[0].mxu1 }
 0x1bc   :  { %332 = vst [vmem:[#allocation2 + $0x8] sm:$0xff] %v461_v40  ;;  %340 = vst [vmem:[#allocation2 + $0x48] sm:$0xff] %v473_v41  ;;  %v252_v59 = vpop.f32.mrb[1].mxu0  ;;  %v292_v60 = vpop.f32.mrb[1].mxu1 }
 0x1bd   :  { %331 = vst [vmem:[#allocation2] sm:$0xff] %v252_v59  ;;  %339 = vst [vmem:[#allocation2 + $0x40] sm:$0xff] %v292_v60 }
 0x1bf   :  { %v464_v61 = vpop.f32.mrb[2].mxu0  ;;  %v476_v62 = vpop.f32.mrb[2].mxu1 }
 0x1c0   :  { %334 = vst [vmem:[#allocation2 + $0x18] sm:$0xff] %v464_v61  ;;  %342 = vst [vmem:[#allocation2 + $0x58] sm:$0xff] %v476_v62  ;;  %v262_v63 = vpop.f32.mrb[3].mxu0  ;;  %v302_v3 = vpop.f32.mrb[3].mxu1 }
 0x1c1   :  { %333 = vst [vmem:[#allocation2 + $0x10] sm:$0xff] %v262_v63  ;;  %341 = vst [vmem:[#allocation2 + $0x50] sm:$0xff] %v302_v3 }
 0x1c3   :  { %v467_v4 = vpop.f32.mrb[4].mxu0  ;;  %v479_v5 = vpop.f32.mrb[4].mxu1 }
 0x1c4   :  { %336 = vst [vmem:[#allocation2 + $0x28] sm:$0xff] %v467_v4  ;;  %344 = vst [vmem:[#allocation2 + $0x68] sm:$0xff] %v479_v5  ;;  %v272_v7 = vpop.f32.mrb[5].mxu0  ;;  %v312_v10 = vpop.f32.mrb[5].mxu1 }
 0x1c5   :  { %335 = vst [vmem:[#allocation2 + $0x20] sm:$0xff] %v272_v7  ;;  %343 = vst [vmem:[#allocation2 + $0x60] sm:$0xff] %v312_v10 }
 0x1c7   :  { %v470_v11 = vpop.f32.mrb[6].mxu0  ;;  %v482_v12 = vpop.f32.mrb[6].mxu1 }
 0x1c8   :  { %338 = vst [vmem:[#allocation2 + $0x38] sm:$0xff] %v470_v11  ;;  %346 = vst [vmem:[#allocation2 + $0x78] sm:$0xff] %v482_v12  ;;  %v282_v13 = vpop.f32.mrb[7].mxu0  ;;  %v322_v14 = vpop.f32.mrb[7].mxu1 }
 0x1c9   :  { %337 = vst [vmem:[#allocation2 + $0x30] sm:$0xff] %v282_v13  ;;  %345 = vst [vmem:[#allocation2 + $0x70] sm:$0xff] %v322_v14 }
 0x1ca   :  { %593 = shalt.err (!%p590_p4)
}
 0x1cb   :  { %s594_s13 = scalar_lea.hbm %s890_s1, 2048 }
 0x1cc   :  { %p595_p5 = scmp.ne.s32.totalorder %s890_s1, %s594_s13  ;;  %p598_p6 = scmp.lt.u32.totalorder %s594_s13, %s890_s1 }
 0x1ce   :  { %p600_p7 = pnand %p598_p6, %p595_p5 }
 0x1d0   :  { %603 = shalt.err (!%p600_p7)
}
 0x1d1   :  { %s607_s18 = smov 128   ;;  %s608_s19 = smov 8  }
 0x1d2   :  { %358 = dma.vmem_to_hbm [thread:$0]  %s353_s9, 2048, %s890_s1, [#allocation3], %s607_s18, %s607_s18, %s608_s19  }
 0x1d3   :  { %604 = dma.done.wait [#allocation3], 2048  }
 0x1d4   :  { %605 = vsyncadd [#allocation3], 4294965248 }
 0x1d5   :  { %362 = vsyncpa [#allocation3], 1 }

</bundles_post_ra>
